<compile_context>
chip_gen: v7x
topology: tpu7x:2x2x1
jax: 0.10.0
libtpu: 0.0.40
codegen_flags: <defaults>
</compile_context>

<pallas_src>
import functools
import math

import jax
import jax.numpy as jnp
from jax.experimental import pallas as pl
from jax.experimental.pallas import tpu as pltpu

ALPHA = 0.25
GAMMA = 2.0
EPS = 1e-6

_LANES = 128
_SUBLANES = 8
_MAX_BLOCK_ROWS = 1024  # 1024 x 128 f32 = 512 KiB per input block


def _pow_gamma(x, gamma):
    """x**gamma without an EUP pow (exp/log) when gamma is a small integer."""
    g = float(gamma)
    if g == 2.0:
        return x * x
    if g.is_integer() and 0.0 <= g <= 8.0:
        return jax.lax.integer_pow(x, int(g))
    return jnp.power(x, g)


def _focal_terms(logits, target, alpha, gamma, eps):
    """Elementwise focal-loss terms, mirroring the PyTorch forward.

    Note: like the reference module's bce(pred + eps, ...), log(1 - (p + eps))
    is NaN if sigmoid saturates to exactly 1.0 in f32 (logits >~ 17); this
    mirrors the original numerics rather than silently changing them.
    """
    p = jax.nn.sigmoid(logits.astype(jnp.float32))
    t = target.astype(jnp.float32)
    x = p + eps
    log_x = jnp.maximum(jnp.log(x), -100.0)        # PyTorch BCE clamps logs at -100
    log_1mx = jnp.maximum(jnp.log(1.0 - x), -100.0)
    bce = -(t * log_x + (1.0 - t) * log_1mx)
    pt = t * p + (1.0 - t) * (1.0 - p)
    weight = alpha * t + (1.0 - alpha) * (1.0 - t)
    return weight * _pow_gamma(1.0 - pt, gamma) * bce


def _focal_loss_kernel(pred_ref, tgt_ref, out_ref, acc_ref, *,
                       rows_valid, block_rows, steps, alpha, gamma, eps):
    core = pl.program_id(0)   # "parallel" axis (TensorCores)
    step = pl.program_id(1)   # "arbitrary" sequential reduction axis

    @pl.when(step == 0)
    def _init():
        acc_ref[...] = jnp.zeros_like(acc_ref)

    focal = _focal_terms(pred_ref[...], tgt_ref[...], alpha, gamma, eps)

    def _tile_sum(v):
        # (block_rows, 128) -> (8, 128): tile-aligned reshape, VPU adds only.
        return v.reshape(block_rows // _SUBLANES, _SUBLANES, _LANES).sum(axis=0)

    logical_block = core * steps + step
    block_start = logical_block * block_rows
    is_full = block_start + block_rows <= rows_valid

    @pl.when(is_full)
    def _acc_full():
        acc_ref[...] += _tile_sum(focal)

    @pl.when(jnp.logical_not(is_full))
    def _acc_masked():
        # Boundary block or redundant (index-clamped) block: drop invalid rows.
        rid = block_start + jax.lax.broadcasted_iota(jnp.int32, focal.shape, 0)
        acc_ref[...] += _tile_sum(jnp.where(rid < rows_valid, focal, 0.0))

    @pl.when(step == steps - 1)
    def _finalize():
        out_ref[0, 0] = jnp.sum(acc_ref[...])


def focal_loss(pred, target, *, alpha=ALPHA, gamma=GAMMA, eps=EPS):
    """pred, target: same-shaped float arrays (e.g. [B, 1, H, W] heatmaps).

    Returns the scalar mean focal loss (reduction='mean').
    """
    assert pred.shape == target.shape
    n = math.prod(pred.shape)
    if n == 0:
        return jnp.float32(0.0)

    rem = n % _LANES
    n_main = n - rem
    rows = n_main // _LANES

    if rows < _SUBLANES:
        # Tiny input: not worth a kernel launch.
        return jnp.sum(_focal_terms(pred.reshape(-1), target.reshape(-1),
                                    alpha, gamma, eps)) / jnp.float32(n)

    if rem == 0:
        # Common case: zero-copy reshape to a lane-dense slab, no tail, no pad.
        pred2d = pred.reshape(rows, _LANES)
        tgt2d = target.reshape(rows, _LANES)
        tail_sum = jnp.float32(0.0)
    else:
        # Only the <128-element tail is handled in plain JAX.
        pred_flat = pred.reshape(-1)
        tgt_flat = target.reshape(-1)
        pred2d = pred_flat[:n_main].reshape(rows, _LANES)
        tgt2d = tgt_flat[:n_main].reshape(rows, _LANES)
        tail_sum = jnp.sum(_focal_terms(pred_flat[n_main:], tgt_flat[n_main:],
                                        alpha, gamma, eps))

    # block_rows is a multiple of 8 and <= rows, so only the last logical block
    # can be a partial boundary block.
    block_rows = min(_MAX_BLOCK_ROWS, (rows // _SUBLANES) * _SUBLANES)
    total_blocks = -(-rows // block_rows)
    # Shard the sequential reduction across 2 TensorCores when there is enough
    # work (no-op on 1-TC chips, up to ~2x on v7x / megacore parts).
    num_cores = 2 if total_blocks >= 2 else 1
    steps = -(-total_blocks // num_cores)

    def _in_index(c, s):
        # num_cores*steps may exceed total_blocks by one: clamp the redundant
        # trailing block; the kernel masks it out by global row index.
        return (jnp.minimum(c * steps + s, total_blocks - 1), 0)

    kernel = functools.partial(
        _focal_loss_kernel,
        rows_valid=rows, block_rows=block_rows, steps=steps,
        alpha=alpha, gamma=gamma, eps=eps)

    partials = pl.pallas_call(
        kernel,
        out_shape=jax.ShapeDtypeStruct((num_cores, 1), jnp.float32),
        grid=(num_cores, steps),
        in_specs=[
            pl.BlockSpec((block_rows, _LANES), _in_index),
            pl.BlockSpec((block_rows, _LANES), _in_index),
        ],
        out_specs=pl.BlockSpec((1, 1), lambda c, s: (c, 0),
                               memory_space=pltpu.SMEM),
        scratch_shapes=[pltpu.VMEM((_SUBLANES, _LANES), jnp.float32)],
        compiler_params=pltpu.CompilerParams(
            dimension_semantics=("parallel", "arbitrary")),
    )(pred2d, tgt2d)

    return (jnp.sum(partials) + tail_sum) / jnp.float32(n)


def _focal_loss_ref(pred, target, *, alpha=ALPHA, gamma=GAMMA, eps=EPS):
    """Pure-JAX reference mirroring the PyTorch forward (reduction='mean')."""
    p = jax.nn.sigmoid(pred.astype(jnp.float32))
    t = target.astype(jnp.float32)
    x = p + eps
    bce = -(t * jnp.maximum(jnp.log(x), -100.0)
            + (1.0 - t) * jnp.maximum(jnp.log(1.0 - x), -100.0))
    pt = t * p + (1.0 - t) * (1.0 - p)
    w = alpha * t + (1.0 - alpha) * (1.0 - t)
    return jnp.mean(w * jnp.power(1.0 - pt, gamma) * bce)


if __name__ == "__main__":
    key = jax.random.PRNGKey(0)
    loss_fn = jax.jit(focal_loss)

    # [B, 1, H, W] heatmaps, as the module's forward implies.
    cases = [
        ((2, 1, 64, 64), jnp.float32),     # single block, single core pass
        ((2, 1, 384, 384), jnp.bfloat16),  # multi-block, 2-way core split, bf16 feed
        ((2, 1, 60, 60), jnp.float32),     # n % 128 != 0 -> JAX-side tail path
    ]
    for shape, dtype in cases:
        key, k1, k2 = jax.random.split(key, 3)
        pred = jax.random.normal(k1, shape, dtype=jnp.float32).astype(dtype)
        # binary target heatmap in {0, 1}
        target = (jax.random.uniform(k2, shape) > 0.9).astype(dtype)

        loss = jax.block_until_ready(loss_fn(pred, target))
        ref = jax.block_until_ready(_focal_loss_ref(pred, target))
        assert jnp.allclose(loss, ref, rtol=2e-4, atol=1e-6), (shape, dtype, loss, ref)

    print("KERNEL_OK")
</pallas_src>

<mosaic_0001>
module attributes {stable_mosaic.version = 11 : i64} {
  func.func @_focal_loss_kernel(%arg0: i32, %arg1: i32, %arg2: memref<64x128xf32, #tpu.memory_space<vmem>>, %arg3: memref<64x128xf32, #tpu.memory_space<vmem>>, %arg4: memref<1x1xf32, #tpu.memory_space<smem>>, %arg5: memref<8x128xf32, #tpu.memory_space<vmem>>) attributes {dimension_semantics = [#tpu.dimension_semantics<parallel>, #tpu.dimension_semantics<arbitrary>], iteration_bounds = array<i64: 1, 1>, scalar_prefetch = 0 : i64, scratch_operands = 1 : i64, tpu.core_type = #tpu.core_type<tc>, window_params = [{transform_indices = @transform_0, window_bounds = array<i64: 64, 128>}, {transform_indices = @transform_1, window_bounds = array<i64: 64, 128>}, {transform_indices = @transform_2, window_bounds = array<i64: 1, 1>}]} {
    %c0_i32 = arith.constant 0 : i32
    %0 = arith.cmpi eq, %arg1, %c0_i32 : i32
    %1 = arith.extui %0 : i1 to i32
    %c0_i32_0 = arith.constant 0 : i32
    %2 = arith.cmpi ne, %1, %c0_i32_0 : i32
    scf.if %2 {
      %cst_22 = arith.constant 0.000000e+00 : f32
      %59 = vector.broadcast %cst_22 : f32 to vector<8x128xf32>
      %c0_23 = arith.constant 0 : index
      %c0_24 = arith.constant 0 : index
      %60 = vector.load %arg5[%c0_23, %c0_24] : memref<8x128xf32, #tpu.memory_space<vmem>>, vector<8x128xf32>
      tpu.vector_store %arg5[%c0_23, %c0_24], %59 {strides = array<i32>} : memref<8x128xf32, #tpu.memory_space<vmem>>, vector<8x128xf32>,
    } else {
    }
    %c0 = arith.constant 0 : index
    %c0_1 = arith.constant 0 : index
    %3 = vector.load %arg2[%c0, %c0_1] : memref<64x128xf32, #tpu.memory_space<vmem>>, vector<64x128xf32>
    %c0_2 = arith.constant 0 : index
    %c0_3 = arith.constant 0 : index
    %4 = vector.load %arg3[%c0_2, %c0_3] : memref<64x128xf32, #tpu.memory_space<vmem>>, vector<64x128xf32>
    %5 = arith.negf %3 : vector<64x128xf32>
    %6 = math.exp %5 : vector<64x128xf32>
    %cst = arith.constant 1.000000e+00 : f32
    %7 = vector.broadcast %cst : f32 to vector<64x128xf32>
    %8 = arith.addf %7, %6 : vector<64x128xf32>
    %9 = arith.divf %7, %8 : vector<64x128xf32>
    %cst_4 = arith.constant 9.99999997E-7 : f32
    %10 = vector.broadcast %cst_4 : f32 to vector<64x128xf32>
    %11 = arith.addf %9, %10 : vector<64x128xf32>
    %12 = math.log %11 : vector<64x128xf32>
    %cst_5 = arith.constant -1.000000e+02 : f32
    %13 = vector.broadcast %cst_5 : f32 to vector<64x128xf32>
    %14 = arith.maximumf %12, %13 : vector<64x128xf32>
    %cst_6 = arith.constant 1.000000e+00 : f32
    %15 = vector.broadcast %cst_6 : f32 to vector<64x128xf32>
    %16 = arith.subf %15, %11 : vector<64x128xf32>
    %17 = math.log %16 : vector<64x128xf32>
    %cst_7 = arith.constant -1.000000e+02 : f32
    %18 = vector.broadcast %cst_7 : f32 to vector<64x128xf32>
    %19 = arith.maximumf %17, %18 : vector<64x128xf32>
    %20 = arith.mulf %4, %14 : vector<64x128xf32>
    %cst_8 = arith.constant 1.000000e+00 : f32
    %21 = vector.broadcast %cst_8 : f32 to vector<64x128xf32>
    %22 = arith.subf %21, %4 : vector<64x128xf32>
    %23 = arith.mulf %22, %19 : vector<64x128xf32>
    %24 = arith.addf %20, %23 : vector<64x128xf32>
    %cst_9 = arith.constant 0.000000e+00 : f32
    %25 = vector.broadcast %cst_9 : f32 to vector<64x128xf32>
    %26 = arith.subf %25, %24 : vector<64x128xf32>
    %27 = arith.mulf %4, %9 : vector<64x128xf32>
    %cst_10 = arith.constant 1.000000e+00 : f32
    %28 = vector.broadcast %cst_10 : f32 to vector<64x128xf32>
    %29 = arith.subf %28, %4 : vector<64x128xf32>
    %cst_11 = arith.constant 1.000000e+00 : f32
    %30 = vector.broadcast %cst_11 : f32 to vector<64x128xf32>
    %31 = arith.subf %30, %9 : vector<64x128xf32>
    %32 = arith.mulf %29, %31 : vector<64x128xf32>
    %33 = arith.addf %27, %32 : vector<64x128xf32>
    %cst_12 = arith.constant 2.500000e-01 : f32
    %34 = vector.broadcast %cst_12 : f32 to vector<64x128xf32>
    %35 = arith.mulf %34, %4 : vector<64x128xf32>
    %cst_13 = arith.constant 1.000000e+00 : f32
    %36 = vector.broadcast %cst_13 : f32 to vector<64x128xf32>
    %37 = arith.subf %36, %4 : vector<64x128xf32>
    %cst_14 = arith.constant 7.500000e-01 : f32
    %38 = vector.broadcast %cst_14 : f32 to vector<64x128xf32>
    %39 = arith.mulf %38, %37 : vector<64x128xf32>
    %40 = arith.addf %35, %39 : vector<64x128xf32>
    %cst_15 = arith.constant 1.000000e+00 : f32
    %41 = vector.broadcast %cst_15 : f32 to vector<64x128xf32>
    %42 = arith.subf %41, %33 : vector<64x128xf32>
    %43 = arith.mulf %42, %42 : vector<64x128xf32>
    %44 = arith.mulf %40, %43 : vector<64x128xf32>
    %45 = arith.mulf %44, %26 : vector<64x128xf32>
    %c1_i32 = arith.constant 1 : i32
    %46 = arith.muli %arg0, %c1_i32 : i32
    %47 = arith.addi %46, %arg1 : i32
    %c64_i32 = arith.constant 64 : i32
    %48 = arith.muli %47, %c64_i32 : i32
    %c64_i32_16 = arith.constant 64 : i32
    %49 = arith.addi %48, %c64_i32_16 : i32
    %c64_i32_17 = arith.constant 64 : i32
    %50 = arith.cmpi sle, %49, %c64_i32_17 : i32
    %51 = arith.extui %50 : i1 to i32
    %c0_i32_18 = arith.constant 0 : i32
    %52 = arith.cmpi ne, %51, %c0_i32_18 : i32
    scf.if %52 {
      %c0_22 = arith.constant 0 : index
      %c0_23 = arith.constant 0 : index
      %59 = vector.load %arg5[%c0_22, %c0_23] : memref<8x128xf32, #tpu.memory_space<vmem>>, vector<8x128xf32>
      %60 = vector.shape_cast %45 : vector<64x128xf32> to vector<8x8x128xf32>
      %cst_24 = arith.constant dense<0.000000e+00> : vector<8x128xf32>
      %61 = vector.multi_reduction <add>, %60, %cst_24 [0] : vector<8x8x128xf32> to vector<8x128xf32>
      %62 = arith.addf %59, %61 : vector<8x128xf32>
      %c0_25 = arith.constant 0 : index
      %c0_26 = arith.constant 0 : index
      %63 = vector.load %arg5[%c0_25, %c0_26] : memref<8x128xf32, #tpu.memory_space<vmem>>, vector<8x128xf32>
      tpu.vector_store %arg5[%c0_25, %c0_26], %62 {strides = array<i32>} : memref<8x128xf32, #tpu.memory_space<vmem>>, vector<8x128xf32>,
    } else {
    }
    %true = arith.constant true
    %53 = arith.xori %50, %true : i1
    %54 = arith.extui %53 : i1 to i32
    %c0_i32_19 = arith.constant 0 : i32
    %55 = arith.cmpi ne, %54, %c0_i32_19 : i32
    scf.if %55 {
      %59 = tpu.iota {dimensions = array<i32: 0>} : vector<64x128xi32>
      %60 = vector.broadcast %48 : i32 to vector<64x128xi32>
      %61 = arith.addi %60, %59 : vector<64x128xi32>
      %c0_22 = arith.constant 0 : index
      %c0_23 = arith.constant 0 : index
      %62 = vector.load %arg5[%c0_22, %c0_23] : memref<8x128xf32, #tpu.memory_space<vmem>>, vector<8x128xf32>
      %c64_i32_24 = arith.constant 64 : i32
      %63 = vector.broadcast %c64_i32_24 : i32 to vector<64x128xi32>
      %64 = arith.cmpi slt, %61, %63 : vector<64x128xi32>
      %cst_25 = arith.constant 0.000000e+00 : f32
      %65 = vector.broadcast %cst_25 : f32 to vector<64x128xf32>
      %66 = arith.select %64, %45, %65 : vector<64x128xi1>, vector<64x128xf32>
      %67 = vector.shape_cast %66 : vector<64x128xf32> to vector<8x8x128xf32>
      %cst_26 = arith.constant dense<0.000000e+00> : vector<8x128xf32>
      %68 = vector.multi_reduction <add>, %67, %cst_26 [0] : vector<8x8x128xf32> to vector<8x128xf32>
      %69 = arith.addf %62, %68 : vector<8x128xf32>
      %c0_27 = arith.constant 0 : index
      %c0_28 = arith.constant 0 : index
      %70 = vector.load %arg5[%c0_27, %c0_28] : memref<8x128xf32, #tpu.memory_space<vmem>>, vector<8x128xf32>
      tpu.vector_store %arg5[%c0_27, %c0_28], %69 {strides = array<i32>} : memref<8x128xf32, #tpu.memory_space<vmem>>, vector<8x128xf32>,
    } else {
    }
    %c0_i32_20 = arith.constant 0 : i32
    %56 = arith.cmpi eq, %arg1, %c0_i32_20 : i32
    %57 = arith.extui %56 : i1 to i32
    %c0_i32_21 = arith.constant 0 : i32
    %58 = arith.cmpi ne, %57, %c0_i32_21 : i32
    scf.if %58 {
      %c0_22 = arith.constant 0 : index
      %c0_23 = arith.constant 0 : index
      %59 = vector.load %arg5[%c0_22, %c0_23] : memref<8x128xf32, #tpu.memory_space<vmem>>, vector<8x128xf32>
      %60 = vector.shape_cast %59 : vector<8x128xf32> to vector<1x8x128xf32>
      %cst_24 = arith.constant dense<0.000000e+00> : vector<1xf32>
      %61 = vector.multi_reduction <add>, %60, %cst_24 [1, 2] : vector<1x8x128xf32> to vector<1xf32>
      %62 = vector.shape_cast %61 : vector<1xf32> to vector<1x1x1xf32>
      %63 = vector.extract %62[0, 0, 0] : f32 from vector<1x1x1xf32>
      %c0_25 = arith.constant 0 : index
      %c0_26 = arith.constant 0 : index
      %64 = memref.load %arg4[%c0_25, %c0_26] : memref<1x1xf32, #tpu.memory_space<smem>>
      memref.store %63, %arg4[%c0_25, %c0_26] : memref<1x1xf32, #tpu.memory_space<smem>>
    } else {
    }
    return
  }
  func.func @transform_0(%arg0: i32, %arg1: i32) -> (i32, i32) {
    %c1_i32 = arith.constant 1 : i32
    %0 = arith.muli %arg0, %c1_i32 : i32
    %1 = arith.addi %0, %arg1 : i32
    %c0_i32 = arith.constant 0 : i32
    %2 = arith.minsi %1, %c0_i32 : i32
    %c0_i32_0 = arith.constant 0 : i32
    %c0_i32_1 = arith.constant 0 : i32
    return %2, %c0_i32_0 : i32, i32
  }
  func.func @transform_1(%arg0: i32, %arg1: i32) -> (i32, i32) {
    %c1_i32 = arith.constant 1 : i32
    %0 = arith.muli %arg0, %c1_i32 : i32
    %1 = arith.addi %0, %arg1 : i32
    %c0_i32 = arith.constant 0 : i32
    %2 = arith.minsi %1, %c0_i32 : i32
    %c0_i32_0 = arith.constant 0 : i32
    %c0_i32_1 = arith.constant 0 : i32
    return %2, %c0_i32_0 : i32, i32
  }
  func.func @transform_2(%arg0: i32, %arg1: i32) -> (i32, i32) {
    %c0_i32 = arith.constant 0 : i32
    %c0_i32_0 = arith.constant 0 : i32
    return %arg0, %c0_i32 : i32, i32
  }
}

</mosaic_0001>

<bundles_post_ra>
// kernel: focal_loss.1
= control target key start
LH: loop header
LB: loop body
LE: loop exit
PB: predicated region body
PF: predicated region fallthrough
CT: control target
= control target key end

     0   :  { %s781_s0 = inlined_call_operand.vmem [shape: f32[64,128], index: 0, kind: input, shape index: {}]   ;;  %s782_s1 = inlined_call_operand.vmem [shape: f32[64,128], index: 1, kind: input, shape index: {}]   ;;  %s783_s2 = inlined_call_operand.hbm [shape: f32[1,1], index: 2, kind: output, shape index: {}]  }
   0x1   :  { %v81_v0 = vld [vmem:[%s781_s0] sm:$0xff]  ;;  %v82_v1 = vld [vmem:[%s781_s0 + $0x8] sm:$0xff]  ;;  %v83_v2 = vld [vmem:[%s781_s0 + $0x10] sm:$0xff] }
   0x2   :  { %v84_v3 = vld [vmem:[%s781_s0 + $0x18] sm:$0xff]  ;;  %v442_v4 = vmul.f32 -1.442695, %v81_v0  ;;  %v85_v5 = vld [vmem:[%s781_s0 + $0x20] sm:$0xff]  ;;  %v86_v6 = vld [vmem:[%s781_s0 + $0x28] sm:$0xff] }
   0x3   :  { %v443_v7 = vmul.f32 -1.442695, %v82_v1  ;;  %v87_v8 = vld [vmem:[%s781_s0 + $0x30] sm:$0xff]  ;;  %v88_v9 = vld [vmem:[%s781_s0 + $0x38] sm:$0xff]  ;;  %v444_v10 = vmul.f32 -1.442695, %v83_v2 }
   0x4   :  { %453 = vpow2.f32 %v442_v4  ;;  %v445_v11 = vmul.f32 -1.442695, %v84_v3  ;;  %v446_v12 = vmul.f32 -1.442695, %v85_v5  ;;  %v447_v13 = vmul.f32 -1.442695, %v86_v6 }
   0x5   :  { %455 = vpow2.f32 %v443_v7  ;;  %v448_v14 = vmul.f32 -1.442695, %v87_v8  ;;  %v449_v15 = vmul.f32 -1.442695, %v88_v9 }
   0x6   :  { %457 = vpow2.f32 %v444_v10 }
   0x7   :  { %459 = vpow2.f32 %v445_v11 }
   0x8   :  { %461 = vpow2.f32 %v446_v12 }
   0x9   :  { %7 = vsyncpa [#allocation4], 0  ;;  %463 = vpow2.f32 %v447_v13  ;;  %v572_v24 = vld [vmem:[%s782_s1] sm:$0xff]  ;;  %v577_v25 = vld [vmem:[%s782_s1 + $0x8] sm:$0xff]  ;;  %s517_s14 = scalar_lea.hbm %s783_s2, 16 }
   0xa   :  { %465 = vpow2.f32 %v448_v14  ;;  %v582_v28 = vld [vmem:[%s782_s1 + $0x10] sm:$0xff]  ;;  %v587_v29 = vld [vmem:[%s782_s1 + $0x18] sm:$0xff]  ;;  %v592_v32 = vld [vmem:[%s782_s1 + $0x20] sm:$0xff]  ;;  %v610_v39 = vsub.f32 1.0, %v572_v24  ;;  %v613_v40 = vsub.f32 1.0, %v577_v25  ;;  %v281_v48 = vmul.f32 0.25, %v572_v24  ;;  %p518_p0 = scmp.ne.s32.totalorder %s783_s2, %s517_s14  ;;  %p521_p1 = scmp.lt.u32.totalorder %s517_s14, %s783_s2 }
   0xb   :  { %467 = vpow2.f32 %v449_v15  ;;  %v597_v33 = vld [vmem:[%s782_s1 + $0x28] sm:$0xff]  ;;  %v602_v34 = vld [vmem:[%s782_s1 + $0x30] sm:$0xff]  ;;  %v607_v37 = vld [vmem:[%s782_s1 + $0x38] sm:$0xff]  ;;  %v616_v42 = vsub.f32 1.0, %v582_v28  ;;  %v619_v43 = vsub.f32 1.0, %v587_v29  ;;  %v622_v44 = vsub.f32 1.0, %v592_v32 }
   0xc   :  { %v625_v45 = vsub.f32 1.0, %v597_v33  ;;  %v628_v46 = vsub.f32 1.0, %v602_v34  ;;  %v631_v47 = vsub.f32 1.0, %v607_v37  ;;  %v282_v49 = vmul.f32 0.25, %v577_v25  ;;  %p523_p2 = pnand %p521_p1, %p518_p0 }
   0xd   :  { %v283_v50 = vmul.f32 0.25, %v582_v28  ;;  %v289_v51 = vmul.f32 0.75, %v610_v39  ;;  %v290_v52 = vmul.f32 0.75, %v613_v40  ;;  %v291_v53 = vmul.f32 0.75, %v616_v42 }
   0xe   :  { %v454_v16 = vpop.eup %453  ;;  %v284_v54 = vmul.f32 0.25, %v587_v29  ;;  %v285_v55 = vmul.f32 0.25, %v592_v32  ;;  %v292_v56 = vmul.f32 0.75, %v619_v43  ;;  %v293_v57 = vmul.f32 0.75, %v622_v44 }
   0xf   :  { %v456_v17 = vpop.eup %455  ;;  %v121_v18 = vadd.f32 1.0, %v454_v16  ;;  %v286_v59 = vmul.f32 0.25, %v597_v33  ;;  %v287_v60 = vmul.f32 0.25, %v602_v34  ;;  %v294_v61 = vmul.f32 0.75, %v625_v45 }
  0x10   :  { %v458_v19 = vpop.eup %457  ;;  %v122_v20 = vadd.f32 1.0, %v456_v17  ;;  %v295_v62 = vmul.f32 0.75, %v628_v46  ;;  %v653_v1 = vmul.f32 0.25, %v607_v37  ;;  %v656_v2 = vmul.f32 0.75, %v631_v47 }
  0x11   :  { %v460_v21 = vpop.eup %459  ;;  %v123_v22 = vadd.f32 1.0, %v458_v19  ;;  %469 = vrcp.f32 %v121_v18  ;;  %v661_v5 = vadd.f32 %v289_v51, %v281_v48  ;;  %v663_v6 = vadd.f32 %v290_v52, %v282_v49 }
  0x12   :  { %v462_v23 = vpop.eup %461  ;;  %v124_v26 = vadd.f32 1.0, %v460_v21  ;;  %471 = vrcp.f32 %v122_v20  ;;  %v665_v7 = vadd.f32 %v291_v53, %v283_v50  ;;  %v670_v10 = vadd.f32 %v292_v56, %v284_v54 }
  0x13   :  { %v464_v27 = vpop.eup %463  ;;  %v125_v30 = vadd.f32 1.0, %v462_v23  ;;  %473 = vrcp.f32 %v123_v22  ;;  %v672_v11 = vadd.f32 %v293_v57, %v285_v55  ;;  %v675_v14 = vadd.f32 %v294_v61, %v286_v59 }
  0x14   :  { %v466_v31 = vpop.eup %465  ;;  %v126_v35 = vadd.f32 1.0, %v464_v27  ;;  %475 = vrcp.f32 %v124_v26  ;;  %v677_v15 = vadd.f32 %v295_v62, %v287_v60 }
  0x15   :  { %v468_v36 = vpop.eup %467  ;;  %v127_v38 = vadd.f32 1.0, %v466_v31  ;;  %477 = vrcp.f32 %v125_v30 }
  0x16   :  { %v128_v41 = vadd.f32 1.0, %v468_v36  ;;  %479 = vrcp.f32 %v126_v35 }
  0x17   :  { %481 = vrcp.f32 %v127_v38 }
  0x18   :  { %483 = vrcp.f32 %v128_v41 }
  0x1b   :  { %v643_v58 = vpop.eup %469 }
  0x1c   :  { %v649_v63 = vpop.eup %471  ;;  %v145_v0 = vadd.f32 1e-06, %v643_v58  ;;  %v681_v18 = vmul.f32 %v643_v58, %v572_v24  ;;  %v257_v19 = vsub.f32 1.0, %v643_v58 }
  0x1d   :  { %v658_v3 = vpop.eup %473  ;;  %v146_v4 = vadd.f32 1e-06, %v649_v63  ;;  %v688_v22 = vmul.f32 %v649_v63, %v577_v25  ;;  %v258_v23 = vsub.f32 1.0, %v649_v63 }
  0x1e   :  { %v667_v8 = vpop.eup %475  ;;  %v147_v9 = vadd.f32 1e-06, %v658_v3  ;;  %485 = vlog2.f32 %v145_v0  ;;  %v177_v30 = vsub.f32 1.0, %v145_v0  ;;  %v251_v31 = vmul.f32 %v658_v3, %v582_v28 }
  0x1f   :  { %v478_v12 = vpop.eup %477  ;;  %v148_v13 = vadd.f32 1e-06, %v667_v8  ;;  %487 = vlog2.f32 %v146_v4  ;;  %v178_v36 = vsub.f32 1.0, %v146_v4  ;;  %v252_v38 = vmul.f32 %v667_v8, %v587_v29 }
  0x20   :  { %v480_v16 = vpop.eup %479  ;;  %v149_v17 = vadd.f32 1e-06, %v478_v12  ;;  %489 = vlog2.f32 %v147_v9  ;;  %v179_v41 = vsub.f32 1.0, %v147_v9  ;;  %v253_v49 = vmul.f32 %v478_v12, %v592_v32 }
  0x21   :  { %v684_v20 = vpop.eup %481  ;;  %v150_v21 = vadd.f32 1e-06, %v480_v16  ;;  %491 = vlog2.f32 %v148_v13  ;;  %v180_v48 = vsub.f32 1.0, %v148_v13  ;;  %v254_v51 = vmul.f32 %v480_v16, %v597_v33 }
  0x22   :  { %v484_v26 = vpop.eup %483  ;;  %v151_v27 = vadd.f32 1e-06, %v684_v20  ;;  %493 = vlog2.f32 %v149_v17  ;;  %v181_v50 = vsub.f32 1.0, %v149_v17  ;;  %v700_v52 = vmul.f32 %v684_v20, %v602_v34 }
  0x23   :  { %v152_v35 = vadd.f32 1e-06, %v484_v26  ;;  %495 = vlog2.f32 %v150_v21  ;;  %v182_v53 = vsub.f32 1.0, %v150_v21  ;;  %v703_v54 = vmul.f32 %v484_v26, %v607_v37 }
  0x24   :  { %497 = vlog2.f32 %v151_v27  ;;  %v259_v55 = vsub.f32 1.0, %v658_v3  ;;  %v183_v56 = vsub.f32 1.0, %v151_v27  ;;  %v260_v57 = vsub.f32 1.0, %v667_v8 }
  0x25   :  { %499 = vlog2.f32 %v152_v35  ;;  %v261_v58 = vsub.f32 1.0, %v478_v12  ;;  %v184_v60 = vsub.f32 1.0, %v152_v35  ;;  %v262_v61 = vsub.f32 1.0, %v480_v16 }
  0x26   :  { %501 = vlog2.f32 %v177_v30  ;;  %v263_v62 = vsub.f32 1.0, %v684_v20  ;;  %v264_v4 = vsub.f32 1.0, %v484_v26  ;;  %v265_v9 = vmul.f32 %v257_v19, %v610_v39 }
  0x27   :  { %503 = vlog2.f32 %v178_v36  ;;  %v266_v3 = vmul.f32 %v258_v23, %v613_v40  ;;  %v267_v8 = vmul.f32 %v259_v55, %v616_v42  ;;  %v268_v16 = vmul.f32 %v260_v57, %v619_v43 }
  0x28   :  { %v486_v59 = vpop.eup %485  ;;  %505 = vlog2.f32 %v179_v41  ;;  %v269_v20 = vmul.f32 %v261_v58, %v622_v44  ;;  %v270_v19 = vmul.f32 %v262_v61, %v625_v45  ;;  %v271_v55 = vmul.f32 %v263_v62, %v628_v46 }
  0x29   :  { %v488_v63 = vpop.eup %487  ;;  %v154_v0 = vmul.f32 0.6931472, %v486_v59  ;;  %507 = vlog2.f32 %v180_v48  ;;  %v717_v57 = vadd.f32 %v265_v9, %v681_v18  ;;  %v722_v61 = vadd.f32 %v267_v8, %v251_v31 }
  0x2a   :  { %v490_v13 = vpop.eup %489  ;;  %v156_v17 = vmul.f32 0.6931472, %v488_v63  ;;  %509 = vlog2.f32 %v181_v50  ;;  %v724_v63 = vadd.f32 %v268_v16, %v252_v38  ;;  %v727_v62 = vadd.f32 %v269_v20, %v253_v49 }
  0x2b   :  { %v492_v12 = vpop.eup %491  ;;  %v158_v21 = vmul.f32 0.6931472, %v490_v13  ;;  %511 = vlog2.f32 %v182_v53  ;;  %v169_v35 = vmax.f32 %v154_v0, -100.0  ;;  %v272_v53 = vmul.f32 %v264_v4, %v631_v47 }
  0x2c   :  { %v494_v27 = vpop.eup %493  ;;  %v160_v30 = vmul.f32 0.6931472, %v492_v12  ;;  %513 = vlog2.f32 %v183_v56  ;;  %v170_v41 = vmax.f32 %v156_v17, -100.0  ;;  %v720_v56 = vadd.f32 %v266_v3, %v688_v22 }
  0x2d   :  { %v496_v26 = vpop.eup %495  ;;  %v162_v36 = vmul.f32 0.6931472, %v494_v27  ;;  %v171_v48 = vmax.f32 %v158_v21, -100.0  ;;  %515 = vlog2.f32 %v184_v60  ;;  %v209_v17 = vmul.f32 %v169_v35, %v572_v24 }
  0x2e   :  { %v498_v23 = vpop.eup %497  ;;  %v164_v50 = vmul.f32 0.6931472, %v496_v26  ;;  %v172_v59 = vmax.f32 %v160_v30, -100.0  ;;  %v210_v18 = vmul.f32 %v170_v41, %v577_v25  ;;  %v731_v21 = vadd.f32 %v270_v19, %v254_v51 }
  0x2f   :  { %v500_v58 = vpop.eup %499  ;;  %v166_v60 = vmul.f32 0.6931472, %v498_v23  ;;  %v173_v13 = vmax.f32 %v162_v36, -100.0  ;;  %v211_v9 = vmul.f32 %v171_v48, %v582_v28  ;;  %v734_v8 = vadd.f32 %v271_v55, %v700_v52 }
  0x30   :  { %v502_v0 = vpop.eup %501  ;;  %v168_v31 = vmul.f32 0.6931472, %v500_v58  ;;  %v174_v3 = vmax.f32 %v164_v50, -100.0  ;;  %v212_v49 = vmul.f32 %v172_v59, %v587_v29  ;;  %v738_v20 = vadd.f32 %v272_v53, %v703_v54 }
  0x31   :  { %v504_v4 = vpop.eup %503  ;;  %v186_v12 = vmul.f32 0.6931472, %v502_v0  ;;  %v175_v30 = vmax.f32 %v166_v60, -100.0  ;;  %v213_v35 = vmul.f32 %v173_v13, %v592_v32  ;;  %v305_v41 = vsub.f32 1.0, %v717_v57 }
  0x32   :  { %v506_v22 = vpop.eup %505  ;;  %v188_v38 = vmul.f32 0.6931472, %v504_v4  ;;  %v176_v23 = vmax.f32 %v168_v31, -100.0  ;;  %v214_v57 = vmul.f32 %v174_v3, %v597_v33 }
  0x33   :  { %v508_v16 = vpop.eup %507  ;;  %v190_v27 = vmul.f32 0.6931472, %v506_v22  ;;  %v201_v24 = vmax.f32 %v186_v12, -100.0  ;;  %v306_v22 = vsub.f32 1.0, %v720_v56 }
  0x34   :  { %v510_v25 = vpop.eup %509  ;;  %v192_v28 = vmul.f32 0.6931472, %v508_v16  ;;  %v202_v51 = vmax.f32 %v188_v38, -100.0  ;;  %v307_v38 = vsub.f32 1.0, %v722_v61 }
  0x35   :  { %v512_v19 = vpop.eup %511  ;;  %v194_v26 = vmul.f32 0.6931472, %v510_v25  ;;  %v203_v36 = vmax.f32 %v190_v27, -100.0  ;;  %v225_v52 = vmul.f32 %v610_v39, %v201_v24  ;;  %v314_v24 = vmul.f32 %v306_v22, %v306_v22 }
  0x36   :  { %v514_v48 = vpop.eup %513  ;;  %v196_v50 = vmul.f32 0.6931472, %v512_v19  ;;  %v204_v29 = vmax.f32 %v192_v28, -100.0  ;;  %v226_v54 = vmul.f32 %v613_v40, %v202_v51  ;;  %v215_v40 = vmul.f32 %v175_v30, %v602_v34 }
  0x37   :  { %v516_v55 = vpop.eup %515  ;;  %v198_v53 = vmul.f32 0.6931472, %v514_v48  ;;  %v205_v58 = vmax.f32 %v194_v26, -100.0  ;;  %v227_v59 = vmul.f32 %v616_v42, %v203_v36  ;;  %v233_v0 = vadd.f32 %v225_v52, %v209_v17 }
  0x38   :  { %v200_v32 = vmul.f32 0.6931472, %v516_v55  ;;  %v206_v60 = vmax.f32 %v196_v50, -100.0  ;;  %v228_v13 = vmul.f32 %v619_v43, %v204_v29  ;;  %v234_v4 = vadd.f32 %v226_v54, %v210_v18 }
  0x39   :  { %v207_v39 = vmax.f32 %v198_v53, -100.0  ;;  %v229_v12 = vmul.f32 %v622_v44, %v205_v58  ;;  %v235_v31 = vadd.f32 %v227_v59, %v211_v9  ;;  %v308_v42 = vsub.f32 1.0, %v724_v63 }
  0x3a   :  { %v208_v17 = vmax.f32 %v200_v32, -100.0  ;;  %v230_v16 = vmul.f32 %v625_v45, %v206_v60  ;;  %v236_v27 = vadd.f32 %v228_v13, %v212_v49  ;;  %v309_v43 = vsub.f32 1.0, %v727_v62 }
  0x3b   :  { %v216_v18 = vmul.f32 %v176_v23, %v607_v37  ;;  %v241_v33 = vsub.f32 0.0, %v233_v0  ;;  %v242_v3 = vsub.f32 0.0, %v234_v4  ;;  %v310_v44 = vsub.f32 1.0, %v731_v21 }
  0x3c   :  { %v231_v56 = vmul.f32 %v628_v46, %v207_v39  ;;  %v237_v34 = vadd.f32 %v229_v12, %v213_v35  ;;  %v313_v9 = vmul.f32 %v305_v41, %v305_v41  ;;  %v243_v61 = vsub.f32 0.0, %v235_v31 }
  0x3d   :  { %v311_v63 = vsub.f32 1.0, %v734_v8  ;;  %v315_v25 = vmul.f32 %v307_v38, %v307_v38  ;;  %v316_v30 = vmul.f32 %v308_v42, %v308_v42  ;;  %v232_v45 = vmul.f32 %v631_v47, %v208_v17 }
  0x3e   :  { %v238_v49 = vadd.f32 %v230_v16, %v214_v57  ;;  %v244_v62 = vsub.f32 0.0, %v236_v27  ;;  %v317_v28 = vmul.f32 %v309_v43, %v309_v43  ;;  %v312_v37 = vsub.f32 1.0, %v738_v20 }
  0x3f   :  { %v318_v51 = vmul.f32 %v310_v44, %v310_v44  ;;  %v321_v21 = vmul.f32 %v313_v9, %v661_v5  ;;  %v322_v46 = vmul.f32 %v314_v24, %v663_v6  ;;  %v239_v35 = vadd.f32 %v231_v56, %v215_v40 }
  0x40   :  { %v245_v19 = vsub.f32 0.0, %v237_v34  ;;  %v323_v26 = vmul.f32 %v315_v25, %v665_v7  ;;  %v324_v8 = vmul.f32 %v316_v30, %v670_v10  ;;  %v319_v36 = vmul.f32 %v311_v63, %v311_v63 }
  0x41   :  { %v325_v52 = vmul.f32 %v317_v28, %v672_v11  ;;  %v329_v47 = vmul.f32 %v321_v21, %v241_v33  ;;  %v330_v41 = vmul.f32 %v322_v46, %v242_v3  ;;  %v240_v48 = vadd.f32 %v232_v45, %v216_v18 }
  0x42   :  { %v246_v23 = vsub.f32 0.0, %v238_v49  ;;  %v304_v20 = vadd.f32 %v656_v2, %v653_v1  ;;  %v331_v50 = vmul.f32 %v323_v26, %v243_v61  ;;  %v320_v5 = vmul.f32 %v312_v37, %v312_v37 }
  0x43   :  { %v326_v6 = vmul.f32 %v318_v51, %v675_v14  ;;  %v332_v29 = vmul.f32 %v324_v8, %v244_v62  ;;  %v345_v54 = vadd.f32 %v330_v41, %v329_v47  ;;  %v247_v55 = vsub.f32 0.0, %v239_v35 }
  0x44   :  { %v327_v7 = vmul.f32 %v319_v36, %v677_v15  ;;  %v333_v10 = vmul.f32 %v325_v52, %v245_v19  ;;  %v248_v58 = vsub.f32 0.0, %v240_v48  ;;  %v328_v11 = vmul.f32 %v320_v5, %v304_v20 }
  0x45   :  { %v346_v53 = vadd.f32 %v345_v54, %v331_v50  ;;  %v334_v59 = vmul.f32 %v326_v6, %v246_v23 }
  0x46   :  { %v335_v32 = vmul.f32 %v327_v7, %v247_v55  ;;  %v336_v13 = vmul.f32 %v328_v11, %v248_v58 }
  0x47   :  { %v347_v0 = vadd.f32 %v346_v53, %v332_v29 }
  0x49   :  { %v348_v60 = vadd.f32 %v347_v0, %v333_v10 }
  0x4b   :  { %v349_v4 = vadd.f32 %v348_v60, %v334_v59 }
  0x4d   :  { %v350_v1 = vadd.f32 %v349_v4, %v335_v32 }
  0x4f   :  { %v351_v2 = vadd.f32 %v350_v1, %v336_v13 }
  0x51   :  { %406 = vadd.xlane.f32.xlu0 %v351_v2 }
  0xde   :  { %v407_v39 = vpop.xlane.xlu0 %406 }
  0xdf   :  { %v408_v14 = vrot.slane %v407_v39, 4 }
  0xe1   :  { %v409_v57 = vadd.f32 %v408_v14, %v407_v39 }
  0xe3   :  { %v410_v12 = vrot.slane %v409_v57, 2 }
  0xe5   :  { %v411_v22 = vadd.f32 %v410_v12, %v409_v57 }
  0xe7   :  { %v412_v40 = vrot.slane %v411_v22, 1 }
  0xe9   :  { %v413_v15 = vadd.f32 %v412_v40, %v411_v22 }
  0xeb   :  { %450 = vpush %v413_v15 }
 0x11c   :  { %s451_s1 = spop %450 }
 0x11d   :  { %416 = sst [smem:[#allocation3]] %s451_s1 }
 0x11e   :  { %526 = shalt.err (!%p523_p2)
}
 0x11f   :  { %s529_s19 = smov [#allocation3]  }
 0x120   :  { %424 = dma.smem_to_hbm %s529_s19, 16, %s783_s2, [#allocation4]  }
 0x121   :  { %527 = dma.done.wait [#allocation4], 16  }
 0x122   :  { %528 = vsyncadd [#allocation4], 4294967280 }
 0x123   :  { %428 = sfence }
 0x124   :  { %429 = vsyncpa [#allocation4], 1 }

</bundles_post_ra>
